<compile_context>
chip_gen: v7x
topology: tpu7x:2x2x1
jax: 0.10.0
libtpu: 0.0.40
codegen_flags: <defaults>
</compile_context>

<pallas_src>
import jax
import jax.numpy as jnp
import numpy as np
from jax.experimental import pallas as pl
from jax.experimental.pallas import tpu as pltpu


def _haar_fused_matrix(wi, dtype=jnp.float32):
    """Fused banded Haar analysis matrix [clo | chi] of shape (wi, wi).

    Entries are +/-0.5 so that, combined with the unscaled H-direction pair
    add/sub, the overall subband scaling equals (1/sqrt(2))**2 == 0.5 exactly.
    The band is shift-invariant for even-aligned windows, so one matrix serves
    every W tile.
    """
    wo = wi // 2
    m = np.zeros((wi, wi), np.float32)
    for j in range(wo):
        m[2 * j, j] = 0.5
        m[2 * j + 1, j] = 0.5            # clo (low-pass columns)
        m[2 * j, wo + j] = 0.5
        m[2 * j + 1, wo + j] = -0.5      # chi (high-pass columns)
    return jnp.asarray(m, dtype)


def _wa_kernel(x_ref, filt_ref, out_ref, ll_ref):
    # x_ref: (C, 2*th, 2*two)   filt_ref: (2*two, 2*two) = [clo | chi]
    # out_ref / ll_ref: (C, th, two)
    C, H2, Wi = x_ref.shape
    th = H2 // 2
    two = Wi // 2

    # ---- H-direction Haar: sublane pair add/sub via strided refs (VPU only).
    x_even = x_ref[:, pl.ds(0, th, stride=2), :]     # rows 0,2,4,...  (C, th, Wi)
    x_odd = x_ref[:, pl.ds(1, th, stride=2), :]      # rows 1,3,5,...  (C, th, Wi)
    row_lo = (x_even + x_odd).reshape(C * th, Wi)    # unscaled low-pass rows
    row_hi = (x_even - x_odd).reshape(C * th, Wi)    # unscaled high-pass rows

    # ---- W-direction Haar on the MXU: two matmuls (was three).
    filt = filt_ref[...]                             # (Wi, Wi) fused [clo|chi]
    lo_both = jnp.dot(row_lo, filt,
                      preferred_element_type=jnp.float32,
                      precision=jax.lax.Precision.HIGHEST)
    LL = lo_both[:, :two].reshape(C, th, two)
    LH = lo_both[:, two:].reshape(C, th, two)
    HL = jnp.dot(row_hi, filt[:, :two],
                 preferred_element_type=jnp.float32,
                 precision=jax.lax.Precision.HIGHEST).reshape(C, th, two)

    # ---- Softmax2d: softmax over channels (axis 0), per (h, w).
    s = LH + HL
    m = jnp.max(s, axis=0, keepdims=True)
    e = jnp.exp(s - m)
    denom = jnp.sum(e, axis=0, keepdims=True)
    r = pl.reciprocal(denom, approx=True)            # EUP recip
    r = r * (2.0 - denom * r)                        # one Newton step -> ~exact
    x_high = e * r

    out = LL * (1.0 + x_high)                        # LL + LL * x_high
    out_ref[...] = out.astype(out_ref.dtype)
    ll_ref[...] = LL.astype(ll_ref.dtype)


def _vmem_capacity_bytes():
    """Physical VMEM capacity (conservative 64 MiB fallback = v7x class)."""
    try:
        info = pltpu.get_tpu_info()
        for attr in ("vmem_capacity_bytes", "vmem_size_bytes", "vmem_bytes"):
            v = getattr(info, attr, None)
            if v:
                return int(v)
    except Exception:
        pass
    return 64 * 1024 * 1024


def _pick_w_tile(Wh):
    """Output lane-tile width.  Multiples of 128 keep stores unmasked and the
    fused filter at (2*two)^2; only divisor tiles are used (no ragged W)."""
    if Wh >= 256:
        for two in (256, 128):
            if Wh % two == 0:
                return two
    return Wh


def _pick_h_tile(Hh, C, wi, itemsize, target_bytes):
    """Output-row tile: full Hh if the input slab fits the budget, else the
    largest multiple of 8 under budget (ragged last block via cdiv)."""
    full_bytes = C * 2 * Hh * wi * itemsize
    if full_bytes <= target_bytes:
        return Hh
    row_bytes = C * 2 * wi * itemsize          # input bytes per output row
    th = int(target_bytes // row_bytes) // 8 * 8
    return max(8, min(th, Hh))


def wa_module_forward(x):
    """x: (N, C, H, W) float32. Returns (output, LL), each (N, C, H//2, W//2)."""
    N, C, H, W = x.shape
    assert H % 2 == 0 and W % 2 == 0, "Haar DWT needs even spatial dims"
    Hh, Wh = H // 2, W // 2
    itemsize = jnp.dtype(x.dtype).itemsize

    two = _pick_w_tile(Wh)        # output lane tile
    wi = 2 * two                  # input lane tile / contraction size
    filt = _haar_fused_matrix(wi, x.dtype)

    cap = _vmem_capacity_bytes()
    if cap >= 96 * 1024 * 1024:   # 128-MiB-class VMEM: v5e / v6e
        target_bytes = 8 * 1024 * 1024
        vmem_ceiling = 100 * 1024 * 1024
    else:                         # 64-MiB-class VMEM: v7x
        target_bytes = 4 * 1024 * 1024
        vmem_ceiling = 52 * 1024 * 1024

    th = _pick_h_tile(Hh, C, wi, itemsize, target_bytes)
    n_ht = pl.cdiv(Hh, th)
    n_wt = Wh // two
    # Guarantee >=2 parallel grid steps when possible (v7x has 2 TensorCores).
    if N * n_ht * n_wt < 2 and Hh > 8:
        th = max(8, (Hh // 2) // 8 * 8)
        n_ht = pl.cdiv(Hh, th)
    grid = (N, n_ht, n_wt)

    # Batch squeezed, channels whole (softmax is over C), H and W tiled.
    x_spec = pl.BlockSpec((pl.Squeezed(), C, 2 * th, wi),
                          lambda b, h, w: (b, 0, h, w))
    filt_spec = pl.BlockSpec((wi, wi), lambda b, h, w: (0, 0))
    out_spec = pl.BlockSpec((pl.Squeezed(), C, th, two),
                            lambda b, h, w: (b, 0, h, w))

    out_shape = (
        jax.ShapeDtypeStruct((N, C, Hh, Wh), x.dtype),   # output
        jax.ShapeDtypeStruct((N, C, Hh, Wh), x.dtype),   # LL (shortcut)
    )

    # Advisory cost: 2 banded matmuls + elementwise DWT + channel softmax.
    n_tiles = N * n_ht * n_wt
    tile_flops = 2 * (C * th) * wi * (wi + two) + 4 * C * th * wi + 8 * C * th * two
    transcendentals = N * C * Hh * Wh + N * Hh * Wh
    bytes_accessed = (N * C * H * W + 2 * N * C * Hh * Wh) * itemsize + wi * wi * 4
    cost = pl.CostEstimate(flops=int(n_tiles * tile_flops),
                           transcendentals=int(transcendentals),
                           bytes_accessed=int(bytes_accessed))

    # Scoped-VMEM request: double-buffered tiles + f32 intermediates + headroom,
    # clamped under the per-generation ceiling.
    unit = C * th * two * 4
    in_tile = C * 2 * th * wi * itemsize
    out_tile = C * th * two * itemsize
    need = 2 * in_tile + 4 * out_tile + 2 * wi * wi * 4 + 16 * unit + (2 << 20)
    vmem_limit = min(max(32 * 1024 * 1024, need), vmem_ceiling)

    f = pl.pallas_call(
        _wa_kernel,
        out_shape=out_shape,
        grid=grid,
        in_specs=[x_spec, filt_spec],
        out_specs=(out_spec, out_spec),
        compiler_params=pltpu.CompilerParams(
            dimension_semantics=("parallel", "parallel", "parallel"),
            vmem_limit_bytes=int(vmem_limit),
        ),
        cost_estimate=cost,
    )
    return f(x, filt)


def wa_module_reference(x):
    """Pure-JAX reference matching the PyTorch module (Haar DWT + Softmax2d)."""
    a = x[:, :, 0::2, 0::2]
    b = x[:, :, 0::2, 1::2]
    c = x[:, :, 1::2, 0::2]
    d = x[:, :, 1::2, 1::2]
    LL = 0.5 * (a + b + c + d)
    LH = 0.5 * (a - b + c - d)   # low rows, high cols
    HL = 0.5 * (a + b - c - d)   # high rows, low cols
    x_high = jax.nn.softmax(LH + HL, axis=1)
    out = LL + LL * x_high
    return out, LL


if __name__ == "__main__":
    # Primary small test shape (NCHW, as the module expects).
    x = jax.random.normal(jax.random.PRNGKey(0), (2, 4, 16, 16), dtype=jnp.float32)
    out, ll = jax.block_until_ready(wa_module_forward(x))
    ref_out, ref_ll = wa_module_reference(x)
    assert out.shape == (2, 4, 8, 8) and ll.shape == (2, 4, 8, 8)
    # LL path is exact (adds + 0.5-scaled HIGHEST-precision matmuls).
    assert jnp.allclose(ll, ref_ll, atol=1e-5, rtol=1e-5)
    # Attention path uses EUP recip + one Newton step: near f32-exact.
    assert jnp.allclose(out, ref_out, atol=1e-4, rtol=1e-4)

    # Second shape exercises the multi-step (forced >=2 parallel) H grid.
    x2 = jax.random.normal(jax.random.PRNGKey(0), (1, 8, 32, 32), dtype=jnp.float32)
    out2, ll2 = jax.block_until_ready(wa_module_forward(x2))
    ref_out2, ref_ll2 = wa_module_reference(x2)
    assert out2.shape == (1, 8, 16, 16) and ll2.shape == (1, 8, 16, 16)
    assert jnp.allclose(ll2, ref_ll2, atol=1e-5, rtol=1e-5)
    assert jnp.allclose(out2, ref_out2, atol=1e-4, rtol=1e-4)

    print("KERNEL_OK")
</pallas_src>

<mosaic_0001>
module attributes {stable_mosaic.version = 11 : i64} {
  func.func @_wa_kernel(%arg0: i32, %arg1: i32, %arg2: i32, %arg3: memref<1x4x16x16xf32, #tpu.memory_space<vmem>>, %arg4: memref<16x16xf32, #tpu.memory_space<vmem>>, %arg5: memref<1x4x8x8xf32, #tpu.memory_space<vmem>>, %arg6: memref<1x4x8x8xf32, #tpu.memory_space<vmem>>) attributes {dimension_semantics = [#tpu.dimension_semantics<parallel>, #tpu.dimension_semantics<parallel>, #tpu.dimension_semantics<parallel>], iteration_bounds = array<i64: 2, 1, 1>, scalar_prefetch = 0 : i64, scratch_operands = 0 : i64, tpu.core_type = #tpu.core_type<tc>, window_params = [{transform_indices = @transform_0, window_bounds = array<i64: 1, 4, 16, 16>}, {pipeline_mode = #tpu.pipeline_mode<synchronous>, transform_indices = @transform_1, window_bounds = array<i64: 16, 16>}, {transform_indices = @transform_2, window_bounds = array<i64: 1, 4, 8, 8>}, {transform_indices = @transform_3, window_bounds = array<i64: 1, 4, 8, 8>}]} {
    %c0 = arith.constant 0 : index
    %c0_0 = arith.constant 0 : index
    %c0_1 = arith.constant 0 : index
    %c0_2 = arith.constant 0 : index
    %0 = tpu.strided_load %arg3[%c0, %c0_0, %c0_1, %c0_2] {strides = array<i32: 1, 1, 2, 1>} : memref<1x4x16x16xf32, #tpu.memory_space<vmem>>, vector<1x4x8x16xf32>
    %1 = vector.shape_cast %0 : vector<1x4x8x16xf32> to vector<4x8x16xf32>
    %c0_3 = arith.constant 0 : index
    %c0_4 = arith.constant 0 : index
    %c1 = arith.constant 1 : index
    %c0_5 = arith.constant 0 : index
    %2 = tpu.strided_load %arg3[%c0_3, %c0_4, %c1, %c0_5] {strides = array<i32: 1, 1, 2, 1>} : memref<1x4x16x16xf32, #tpu.memory_space<vmem>>, vector<1x4x8x16xf32>
    %3 = vector.shape_cast %2 : vector<1x4x8x16xf32> to vector<4x8x16xf32>
    %4 = arith.addf %1, %3 : vector<4x8x16xf32>
    %5 = vector.shape_cast %4 : vector<4x8x16xf32> to vector<32x16xf32>
    %6 = arith.subf %1, %3 : vector<4x8x16xf32>
    %7 = vector.shape_cast %6 : vector<4x8x16xf32> to vector<32x16xf32>
    %c0_6 = arith.constant 0 : index
    %c0_7 = arith.constant 0 : index
    %8 = vector.load %arg4[%c0_6, %c0_7] : memref<16x16xf32, #tpu.memory_space<vmem>>, vector<16x16xf32>
    %cst = arith.constant dense<0.000000e+00> : vector<32x16xf32>
    %9 = tpu.matmul %5, %8, %cst {dimension_numbers = #tpu.dot_dimension_numbers<[1], [0], [0], [1], [0, 0, 1, 1], [], []>, precision = #tpu.contract_precision<fp32>} : vector<32x16xf32>, vector<16x16xf32>, vector<32x16xf32> -> vector<32x16xf32>
    %10 = vector.extract_strided_slice %9 {offsets = [0, 0], sizes = [32, 8], strides = [1, 1]} : vector<32x16xf32> to vector<32x8xf32>
    %11 = vector.shape_cast %10 : vector<32x8xf32> to vector<4x8x8xf32>
    %12 = vector.extract_strided_slice %9 {offsets = [0, 8], sizes = [32, 8], strides = [1, 1]} : vector<32x16xf32> to vector<32x8xf32>
    %13 = vector.shape_cast %12 : vector<32x8xf32> to vector<4x8x8xf32>
    %14 = vector.extract_strided_slice %8 {offsets = [0, 0], sizes = [16, 8], strides = [1, 1]} : vector<16x16xf32> to vector<16x8xf32>
    %cst_8 = arith.constant dense<0.000000e+00> : vector<32x8xf32>
    %15 = tpu.matmul %7, %14, %cst_8 {dimension_numbers = #tpu.dot_dimension_numbers<[1], [0], [0], [1], [0, 0, 1, 1], [], []>, precision = #tpu.contract_precision<fp32>} : vector<32x16xf32>, vector<16x8xf32>, vector<32x8xf32> -> vector<32x8xf32>
    %16 = vector.shape_cast %15 : vector<32x8xf32> to vector<4x8x8xf32>
    %17 = arith.addf %13, %16 : vector<4x8x8xf32>
    %cst_9 = arith.constant dense<0xFF800000> : vector<8x8xf32>
    %18 = vector.multi_reduction <maximumf>, %17, %cst_9 [0] : vector<4x8x8xf32> to vector<8x8xf32>
    %19 = vector.shape_cast %18 : vector<8x8xf32> to vector<1x8x8xf32>
    %20 = vector.broadcast %19 : vector<1x8x8xf32> to vector<4x8x8xf32>
    %21 = arith.subf %17, %20 : vector<4x8x8xf32>
    %22 = math.exp %21 : vector<4x8x8xf32>
    %cst_10 = arith.constant dense<0.000000e+00> : vector<8x8xf32>
    %23 = vector.multi_reduction <add>, %22, %cst_10 [0] : vector<4x8x8xf32> to vector<8x8xf32>
    %24 = vector.shape_cast %23 : vector<8x8xf32> to vector<1x8x8xf32>
    %25 = tpu.reciprocal %24 {approx = true} : vector<1x8x8xf32> -> vector<1x8x8xf32>
    %26 = arith.mulf %24, %25 : vector<1x8x8xf32>
    %cst_11 = arith.constant 2.000000e+00 : f32
    %27 = vector.broadcast %cst_11 : f32 to vector<1x8x8xf32>
    %28 = arith.subf %27, %26 : vector<1x8x8xf32>
    %29 = arith.mulf %25, %28 : vector<1x8x8xf32>
    %30 = vector.broadcast %29 : vector<1x8x8xf32> to vector<4x8x8xf32>
    %31 = arith.mulf %22, %30 : vector<4x8x8xf32>
    %cst_12 = arith.constant 1.000000e+00 : f32
    %32 = vector.broadcast %cst_12 : f32 to vector<4x8x8xf32>
    %33 = arith.addf %32, %31 : vector<4x8x8xf32>
    %34 = arith.mulf %11, %33 : vector<4x8x8xf32>
    %c0_13 = arith.constant 0 : index
    %c0_14 = arith.constant 0 : index
    %c0_15 = arith.constant 0 : index
    %c0_16 = arith.constant 0 : index
    %35 = vector.load %arg5[%c0_13, %c0_14, %c0_15, %c0_16] : memref<1x4x8x8xf32, #tpu.memory_space<vmem>>, vector<1x4x8x8xf32>
    %36 = vector.shape_cast %35 : vector<1x4x8x8xf32> to vector<4x8x8xf32>
    %37 = vector.shape_cast %34 : vector<4x8x8xf32> to vector<1x4x8x8xf32>
    tpu.vector_store %arg5[%c0_13, %c0_14, %c0_15, %c0_16], %37 {strides = array<i32>} : memref<1x4x8x8xf32, #tpu.memory_space<vmem>>, vector<1x4x8x8xf32>,
    %c0_17 = arith.constant 0 : index
    %c0_18 = arith.constant 0 : index
    %c0_19 = arith.constant 0 : index
    %c0_20 = arith.constant 0 : index
    %38 = vector.load %arg6[%c0_17, %c0_18, %c0_19, %c0_20] : memref<1x4x8x8xf32, #tpu.memory_space<vmem>>, vector<1x4x8x8xf32>
    %39 = vector.shape_cast %38 : vector<1x4x8x8xf32> to vector<4x8x8xf32>
    %40 = vector.shape_cast %11 : vector<4x8x8xf32> to vector<1x4x8x8xf32>
    tpu.vector_store %arg6[%c0_17, %c0_18, %c0_19, %c0_20], %40 {strides = array<i32>} : memref<1x4x8x8xf32, #tpu.memory_space<vmem>>, vector<1x4x8x8xf32>,
    return
  }
  func.func @transform_0(%arg0: i32, %arg1: i32, %arg2: i32) -> (i32, i32, i32, i32) {
    %c0_i32 = arith.constant 0 : i32
    %c0_i32_0 = arith.constant 0 : i32
    return %arg0, %c0_i32, %arg1, %arg2 : i32, i32, i32, i32
  }
  func.func @transform_1(%arg0: i32, %arg1: i32, %arg2: i32) -> (i32, i32) {
    %c0_i32 = arith.constant 0 : i32
    %c0_i32_0 = arith.constant 0 : i32
    %c0_i32_1 = arith.constant 0 : i32
    return %c0_i32, %c0_i32_0 : i32, i32
  }
  func.func @transform_2(%arg0: i32, %arg1: i32, %arg2: i32) -> (i32, i32, i32, i32) {
    %c0_i32 = arith.constant 0 : i32
    %c0_i32_0 = arith.constant 0 : i32
    return %arg0, %c0_i32, %arg1, %arg2 : i32, i32, i32, i32
  }
  func.func @transform_3(%arg0: i32, %arg1: i32, %arg2: i32) -> (i32, i32, i32, i32) {
    %c0_i32 = arith.constant 0 : i32
    %c0_i32_0 = arith.constant 0 : i32
    return %arg0, %c0_i32, %arg1, %arg2 : i32, i32, i32, i32
  }
}

</mosaic_0001>

<bundles_post_ra>
// kernel: tpu_custom_call.1
= control target key start
LH: loop header
LB: loop body
LE: loop exit
PB: predicated region body
PF: predicated region fallthrough
CT: control target
= control target key end

     0   :  { %9 = vsyncpa [#allocation3], 0  ;;  %s2807_s0 = inlined_call_operand.hbm [shape: f32[2,4,16,16], index: 0, kind: input, shape index: {}]   ;;  %s2808_s1 = inlined_call_operand.hbm [shape: f32[16,16], index: 1, kind: input, shape index: {}]   ;;  %s2809_s2 = inlined_call_operand.hbm [shape: f32[2,4,8,8], index: 2, kind: output, shape index: {0}]   ;;  %s2810_s3 = inlined_call_operand.hbm [shape: f32[2,4,8,8], index: 3, kind: output, shape index: {1}]  }
   0x1   :  { %11 = vsyncpa [#allocation3 + $0x1], 0 }
   0x2   :  { %12 = vsyncpa [#allocation6], 0 }
   0x3   :  { %13 = vsyncpa [#allocation4], 0 }
   0x4   :  { %15 = vsyncpa [#allocation4 + $0x1], 0 }
   0x5   :  { %16 = vsyncpa [#allocation9], 0 }
   0x6   :  { %18 = vsyncpa [#allocation9 + $0x1], 0  ;;  %s2350_s12 = smov 0   ;;  %s2352_s13 = smov 0  }
   0x7   :  { %s2354_s14 = smov 0   ;;  %s2356_s15 = smov 0  }
   0x8   :  { %s2358_s16 = smov 0   ;;  %s2360_s17 = smov 0  }
   0x9 LB: > { %s1739_s18 = sadd.s32 4294967295, %s2319_s17   ;;  %s1740_s19 = sadd.s32 4294967294, %s2319_s17   ;;  %s2319_s17 = sphi %s2360_s17, %s24_s17   ;;  %s2315_s16 = sphi %s2358_s16, %s2834_s16   ;;  %s2311_s15 = sphi %s2356_s15, %s2833_s15   ;;  %s2307_s14 = sphi %s2354_s14, %s2832_s14   ;;  %s2303_s13 = sphi %s2352_s13, %s2831_s13   ;;  %s2299_s12 = sphi %s2350_s12, %s2830_s12  }
   0xa   : > { %p67_p0 = scmp.ne.s32.totalorder %s2303_s13, %s2299_s12  ;;  %p2384_p1 = scmp.eq.s32.totalorder %s1739_s18, 0 }
   0xb   : > { %p2388_p2 = scmp.eq.s32.totalorder %s1739_s18, 1  ;;  %p122_p3 = scmp.eq.s32.totalorder %s1740_s19, 1 }
   0xc   : > { %s2815_s20 = scalar_select %p2384_p1, 1, 0 }
   0xd   : > { %s2816_s21 = scalar_select %p2388_p2, 1, 0 }
   0xe   : > { %p2394_p4 = por %p2384_p1, %p67_p0  ;;  %p1741_p5 = scmp.ge.s32.totalorder %s2319_s17, 1 }
   0xf   : > { %p2399_p6 = por %p122_p3, %p67_p0  ;;  %p159_p7 = scmp.lt.s32.totalorder %s2319_s17, 3 }
  0x10   : > { %s2817_s22 = scalar_select %p2394_p4, 1, 0 }
  0x11   : > { %s2818_s23 = scalar_select %p2399_p6, 1, 0 }
  0x12   : > { %p2404_p8 = pnand %p1741_p5, %p159_p7  ;;  %s2321_s25 = smov [#allocation5]  }
  0x13   : > { %s171_s26 = sshll.u32 %s2321_s25, 4  ;;  %s43_s28 = sadd.s32 1, %s2315_s16  ;;  %s172_s26 = int_to_ptr.vmem [resolvable:$true] %s171_s26 }
  0x14   : > { %s2819_s24 = scalar_select %p2404_p8, 1, 0 }
  0x15   : > { %p2060_p9 = pneg %p2404_p8  ;;  %s2143_s4 = scalar_lea.hbm %s2808_s1, 256 }
  0x16   : > { %p2144_p12 = scmp.ne.s32.totalorder %s2808_s1, %s2143_s4  ;;  %p2150_p5 = scmp.lt.u32.totalorder %s2143_s4, %s2808_s1 }
  0x17   : > { %p2413_p11 = pnand %p2060_p9, %p2384_p1 }
  0x19   : > { %p2145_p13 = pneg %p2413_p11 }
  0x1b   : > { %p2146_p0 = pnand %p2145_p13, %p2144_p12 }
  0x1d   : > { %p2147_p3 = pneg %p2146_p0 }
  0x1f   : > { %p2152_p7 = pnand %p2150_p5, %p2147_p3 }
  0x21   : > { %2155 = shalt.err (!%p2152_p7)
}
  0x22   : > { %s2156_s9 = scalar_lea.vmem %s172_s26, 256  ;;  %p2164_p1 = scmp.lt.s32.totalorder %s172_s26, %s172_s26 }
  0x23   : > { %p2157_p9 = scmp.ne.s32.totalorder %s172_s26, %s2156_s9  ;;  %p2165_p4 = scmp.lt.s32.totalorder %s2156_s9, %s2156_s9 }
  0x25   : > { %p2159_p10 = pnand %p2157_p9, %p2145_p13  ;;  %p2166_p8 = por %p2165_p4, %p2164_p1 }
  0x27   : > { %p2160_p6 = pneg %p2159_p10 }
  0x29   : > { %p2167_p2 = pnand %p2166_p8, %p2160_p6 }
  0x2b   : > { %2170 = shalt.err (!%p2167_p2)
}
  0x2c   : > { %s2322_s10 = smov 128   ;;  %s2323_s11 = smov 8  }
  0x2d   : > { %2063 = dma.hbm_to_vmem [thread:$0]  (!%p2413_p11), %s2808_s1, 256, %s172_s26, [#allocation6], %s2322_s10, %s2322_s10, %s2323_s11  }
  0x2e   : > { %p45_p1 = scmp.ge.s32.totalorder %s43_s28, 2  ;;  %s54_s25 = sadd.s32 1, %s2307_s14 }
  0x2f   : > { %p61_p2 = scmp.ne.s32.totalorder %s2307_s14, %s2303_s13  ;;  %p62_p4 = scmp.eq.s32.totalorder %s2319_s17, 0 }
  0x30   : > { %s2836_s28 = smov (%p45_p1, %s43_s28), 0  ;;  %p2822_p8 = scmp.ne.s32.totalorder %s2816_s21, 0 }
  0x31   : > { %p2443_p6 = por %p62_p4, %p61_p2  ;;  %s47_s30 = ssub.s32 %s2315_s16, %s2836_s28 }
  0x32   : > { %p2449_p10 = por %p2822_p8, %p61_p2  ;;  %p2076_p12 = scmp.lt.s32.totalorder %s2319_s17, 2 }
  0x33   : > { %p52_p11 = scmp.eq.s32.totalorder %s47_s30, 0  ;;  %s185_s26 = sand.u32 1, %s2307_s14  }
  0x34   : > { %s1744_s4 = sshll.u32 %s185_s26, 6  ;;  %s1767_s6 = sshll.u32 %s2315_s16, 10 }
  0x35   : > { %s2458_s5 = scalar_select %p52_p11, %s2307_s14, %s54_s25  }
  0x36   : > { %s2464_s9 = scalar_lea.hbm %s2807_s0, %s1767_s6  ;;  %s189_s21 = scalar_lea.vmem [#allocation2], %s1744_s4 }
  0x37   : > { %s199_s18 = sshll.u32 %s189_s21, 4  ;;  %p2470_p13 = pnand %p2076_p12, %p2443_p6  ;;  %s2466_s18 = int_to_ptr.vmem [resolvable:$true] %s199_s18 }
  0x38   : > { %s2474_s25 = scalar_lea.sflag [#allocation3], %s185_s26  ;;  %s2171_s30 = scalar_lea.hbm %s2464_s9, 1024 }
  0x39   : > { %p2172_p0 = scmp.ne.s32.totalorder %s2464_s9, %s2171_s30  ;;  %p2173_p3 = pneg %p2470_p13 }
  0x3a   : > { %s2176_s29 = scalar_lea.hbm %s2807_s0, 2048  ;;  %p2177_p9 = scmp.lt.u32.totalorder %s2464_s9, %s2807_s0 }
  0x3b   : > { %p2174_p5 = pnand %p2173_p3, %p2172_p0  ;;  %p2178_p1 = scmp.lt.u32.totalorder %s2176_s29, %s2171_s30 }
  0x3c   : > { %p2180_p4 = scmp.lt.u32.totalorder %s2171_s30, %s2464_s9 }
  0x3d   : > { %p2175_p7 = pneg %p2174_p5  ;;  %p2179_p2 = por %p2178_p1, %p2177_p9 }
  0x3f   : > { %p2181_p6 = por %p2180_p4, %p2179_p2 }
  0x41   : > { %p2182_p8 = pnand %p2181_p6, %p2175_p7 }
  0x43   : > { %2185 = shalt.err (!%p2182_p8)
}
  0x44   : > { %s2186_s26 = scalar_lea.vmem %s2466_s18, 1024  ;;  %s2324_s21 = smov [#allocation2]  }
  0x45   : > { %p2187_p12 = scmp.ne.s32.totalorder %s2466_s18, %s2186_s26  ;;  %s2191_s4 = sshll.u32 %s2324_s21, 4  ;;  %s2192_s4 = int_to_ptr.vmem [resolvable:$false] %s2191_s4 }
  0x46   : > { %s2193_s6 = scalar_lea.vmem %s2192_s4, 2048  ;;  %p2194_p5 = scmp.lt.s32.totalorder %s2466_s18, %s2192_s4 }
  0x47   : > { %p2189_p11 = pnand %p2187_p12, %p2173_p3  ;;  %p2195_p9 = scmp.lt.s32.totalorder %s2193_s6, %s2186_s26 }
  0x49   : > { %p2190_p0 = pneg %p2189_p11  ;;  %p2196_p1 = por %p2195_p9, %p2194_p5 }
  0x4b   : > { %p2197_p2 = pnand %p2196_p1, %p2190_p0 }
  0x4d   : > { %2200 = shalt.err (!%p2197_p2)
}
  0x4e   : > { %2067 = dma.hbm_to_vmem [thread:$0]  (!%p2470_p13), %s2464_s9, 1024, %s2466_s18, %s2474_s25, %s2322_s10, %s2322_s10, %s2323_s11  }
  0x4f   : > { %p2825_p3 = scmp.ne.s32.totalorder %s2819_s24, 0 }
  0x50   : > { %s2508_s30 = sand.u32 (!%p2825_p3), 1, %s2303_s13   ;;  %p2826_p7 = scmp.ne.s32.totalorder (!%p2825_p3), %s2817_s22, 0 }
  0x51   : > { %211 = sbr.rel (%p2825_p3) target bundleno = 681 (0x2a9), region = 28  ;;  %s1748_s29 = sshll.u32 (!%p2825_p3), %s2508_s30, 6 }
  0x52   : > { %s214_s7 = scalar_lea.sflag (!%p2825_p3), [#allocation3], %s2508_s30  ;;  %s217_s8 = scalar_lea.vmem (!%p2825_p3), [#allocation2], %s1748_s29 }
  0x58   : > { %2282 = dma.done.wait (%p2826_p7), %s214_s7, 1024  }
  0x59   : > { %2284 = vsyncadd (%p2826_p7), %s214_s7, 4294966272  ;;  %p2827_p4 = scmp.ne.s32.totalorder %s2815_s20, 0 }
  0x5b   : > { %2286 = dma.done.wait (%p2827_p4), [#allocation6], 256  }
  0x5c   : > { %2288 = vsyncadd (%p2827_p4), [#allocation6], 4294967040  ;;  %v273_v0 = vld [vmem:[#allocation5] sm:$0xff]  ;;  %v274_v1 = vld [vmem:[#allocation5 + $0x8] sm:$0xff]  ;;  %vm275_vm0 = vcmask 130048   ;;  %s2325_s20 = smov 8  }
  0x5d   : > { %v250_v2 = vld [vmem:[%s217_s8] ss:$2 sm:$0xff]  ;;  %v289_v3 = vand.u32 4294901760, %v273_v0  ;;  %v292_v4 = vand.u32 4294901760, %v274_v1  ;;  %v1755_v5 = vld [vmem:[%s217_s8 + $0x1] ss:$2 sm:$0xff] }
  0x5e   : > { %v1752_v6 = vld [vmem:[%s217_s8 + $0x10] ss:$2 sm:$0xff]  ;;  %v269_v7 = vsub.f32 %v250_v2, %v1755_v5  ;;  %v1756_v8 = vld [vmem:[%s217_s8 + $0x11] ss:$2 sm:$0xff]  ;;  %v1753_v9 = vld [vmem:[%s217_s8 + $0x20] ss:$2 sm:$0xff]  ;;  %v265_v11 = vadd.f32 %v1755_v5, %v250_v2 }
  0x5f   : > { %v1757_v10 = vld [vmem:[%s217_s8 + $0x21] ss:$2 sm:$0xff]  ;;  %v2520_v12 = vpack.c.bf16 %v292_v4, %v289_v3  ;;  %v2522_v13 = vsub.f32 %v273_v0, %v289_v3  ;;  %v2524_v14 = vsub.f32 %v274_v1, %v292_v4  ;;  %v270_v15 = vsub.f32 %v1752_v6, %v1756_v8  ;;  %v1754_v16 = vld [vmem:[%s217_s8 + $0x30] ss:$2 sm:$0xff]  ;;  %v1758_v17 = vld [vmem:[%s217_s8 + $0x31] ss:$2 sm:$0xff] }
  0x60   : > { %v877_v18 = vsel %vm275_vm0, %v269_v7, 0  ;;  %v271_v19 = vsub.f32 %v1753_v9, %v1757_v10  ;;  %v272_v20 = vsub.f32 %v1754_v16, %v1758_v17  ;;  %v277_v21 = vsel %vm275_vm0, %v265_v11, 0  ;;  %s1750_s22 = sshll.u32 %s2508_s30, 5  ;;  %s1768_s11 = sshll.u32 %s2311_s15, 9 }
  0x61   : > { %1987 = vmatprep.subr.bf16.mxu1 %v2520_v12  ;;  %v2529_v22 = vand.u32 4294901760, %v877_v18  ;;  %v398_v23 = vand.u32 4294901760, %v2522_v13  ;;  %v405_v24 = vand.u32 4294901760, %v2524_v14  ;;  %v880_v25 = vsel %vm275_vm0, %v270_v15, 0  ;;  %1963 = vmatprep.subr.bf16.mxu0 %v2520_v12  ;;  %s2667_s24 = scalar_lea.vmem [#allocation8], %s1750_s22  ;;  %s2709_s19 = scalar_lea.hbm %s2810_s3, %s1768_s11 }
  0x62   : > { %1989 = vmatpush3.bf16.msra.mxu1 %v2520_v12  ;;  %v2536_v26 = vand.u32 4294901760, %v880_v25  ;;  %v883_v27 = vsel %vm275_vm0, %v271_v19, 0  ;;  %v886_v28 = vsel %vm275_vm0, %v272_v20, 0  ;;  %1965 = vmatpush3.bf16.msra.mxu0 %v2520_v12  ;;  %v2559_v35 = vpack.c.bf16 %v2524_v14, %v2522_v13  ;;  %s1603_s10 = sshll.u32 %s2667_s24, 4  ;;  %s1570_s25 = scalar_lea.sflag [#allocation9], %s2508_s30  ;;  %s2701_s10 = int_to_ptr.vmem [resolvable:$true] %s1603_s10 }
  0x63   : > { %v2542_v29 = vsub.f32 %v877_v18, %v2529_v22  ;;  %v399_v30 = vsub.f32 %v2522_v13, %v398_v23  ;;  %v406_v31 = vsub.f32 %v2524_v14, %v405_v24  ;;  %v2550_v32 = vand.u32 4294901760, %v883_v27  ;;  %s2201_s26 = scalar_lea.vmem %s2701_s10, 512  ;;  %s2326_s21 = smov [#allocation8]  }
  0x64   : > { %v2553_v33 = vsub.f32 %v880_v25, %v2536_v26  ;;  %v2555_v34 = vand.u32 4294901760, %v886_v28  ;;  %v2561_v36 = vand.u32 4294901760, %v277_v21  ;;  %v266_v44 = vadd.f32 %v1756_v8, %v1752_v6  ;;  %p2202_p13 = scmp.ne.s32.totalorder %s2701_s10, %s2201_s26  ;;  %s2205_s4 = sshll.u32 %s2326_s21, 4  ;;  %s2206_s4 = int_to_ptr.vmem [resolvable:$false] %s2205_s4 }
  0x65   : > { %v957_v37 = vand.u32 4294901760, %v2542_v29  ;;  %v400_v38 = vand.u32 4294901760, %v399_v30  ;;  %v407_v39 = vand.u32 4294901760, %v406_v31  ;;  %v2565_v40 = vsub.f32 %v883_v27, %v2550_v32  ;;  %s2207_s6 = scalar_lea.vmem %s2206_s4, 1024  ;;  %p2208_p12 = scmp.lt.s32.totalorder %s2701_s10, %s2206_s4 }
  0x66   : > { %v967_v41 = vand.u32 4294901760, %v2553_v33  ;;  %v2569_v42 = vsub.f32 %v886_v28, %v2555_v34  ;;  %v2572_v43 = vsub.f32 %v277_v21, %v2561_v36  ;;  %v267_v48 = vadd.f32 %v1757_v10, %v1753_v9  ;;  %p2203_p6 = pnand %p2202_p13, %p2449_p10  ;;  %p2209_p11 = scmp.lt.s32.totalorder %s2207_s6, %s2201_s26 }
  0x67   : > { %v958_v45 = vsub.f32 %v2542_v29, %v957_v37  ;;  %v1966_v46 = vpack.c.bf16 %v407_v39, %v400_v38  ;;  %v977_v47 = vand.u32 4294901760, %v2565_v40  ;;  %v280_v52 = vsel %vm275_vm0, %v266_v44, 0 }
  0x68   : > { %v968_v49 = vsub.f32 %v2553_v33, %v967_v41  ;;  %v987_v50 = vand.u32 4294901760, %v2569_v42  ;;  %v357_v51 = vand.u32 4294901760, %v2572_v43  ;;  %v2587_v55 = vand.u32 4294901760, %v280_v52  ;;  %p2204_p8 = pneg %p2203_p6  ;;  %p2210_p0 = por %p2209_p11, %p2208_p12 }
  0x69   : > { %v959_v53 = vand.u32 4294901760, %v958_v45  ;;  %1991 = vmatprep.subr.bf16.mxu1 %v1966_v46  ;;  %v978_v54 = vsub.f32 %v2565_v40, %v977_v47  ;;  %v283_v56 = vsel %vm275_vm0, %v267_v48, 0  ;;  %1967 = vmatprep.subr.bf16.mxu0 %v1966_v46  ;;  %v268_v63 = vadd.f32 %v1758_v17, %v1754_v16 }
  0x6a   : > { %v969_v57 = vand.u32 4294901760, %v968_v49  ;;  %v988_v58 = vsub.f32 %v2569_v42, %v987_v50  ;;  %v358_v59 = vsub.f32 %v2572_v43, %v357_v51  ;;  %v2596_v60 = vand.u32 4294901760, %v283_v56  ;;  %p2211_p5 = pnand %p2210_p0, %p2204_p8 }
  0x6b   : > { %1906 = vmatprep.mubr.f32.mxu1 %v959_v53  ;;  %v979_v61 = vand.u32 4294901760, %v978_v54  ;;  %v366_v62 = vsub.f32 %v280_v52, %v2587_v55  ;;  %v286_v4 = vsel %vm275_vm0, %v268_v63, 0  ;;  %v1978_v18 = vpack.c.bf16 %v405_v24, %v398_v23 }
  0x6c   : > { %1907 = vmatmul.mubr.f32.vlgmr.msra.gmra.mrb[0].mxu1 %v969_v57  ;;  %v989_v0 = vand.u32 4294901760, %v988_v58  ;;  %v359_v1 = vand.u32 4294901760, %v358_v59  ;;  %v376_v2 = vsub.f32 %v283_v56, %v2596_v60  ;;  %v2602_v6 = vand.u32 4294901760, %v286_v4 }
  0x6d   : > { %1993 = vmatpush3.bf16.msra.mxu1 %v1966_v46  ;;  %1909 = vmatprep.mubr.f32.mxu1 %v979_v61  ;;  %v367_v3 = vand.u32 4294901760, %v366_v62  ;;  %vm1555_vm1 = vcmask 64512   ;;  %vm1496_vm2 = vcmask 130112  }
  0x6e   : > { %1995 = vmatprep.subr.bf16.mxu1 %v2559_v35  ;;  %1846 = vmatprep.mubr.f32.mxu0 %v359_v1  ;;  %v377_v5 = vand.u32 4294901760, %v376_v2  ;;  %v386_v9 = vsub.f32 %v286_v4, %v2602_v6 }
  0x6f   : > { %v368_v7 = vsub.f32 %v366_v62, %v367_v3 }
  0x70   : > { %1910 = vmatmul.mubr.f32.gmra.mrb[2].mxu1 %v989_v0  ;;  %v378_v8 = vsub.f32 %v376_v2, %v377_v5  ;;  %v387_v15 = vand.u32 4294901760, %v386_v9 }
  0x71   : > { %1916 = vmatprep.mubr.f32.mxu1 %v2529_v22  ;;  %v369_v10 = vand.u32 4294901760, %v368_v7 }
  0x72   : > { %v379_v11 = vand.u32 4294901760, %v378_v8  ;;  %v388_v16 = vsub.f32 %v386_v9, %v387_v15 }
  0x73   : > { %1847 = vmatmul.mubr.f32.vlgmr.msra.gmra.mrb[0].mxu0 %v369_v10 }
  0x74   : > { %1917 = vmatmul.mubr.f32.vlgmr.msra.gmra.mrb[0].mxu1 %v2536_v26  ;;  %1849 = vmatprep.mubr.f32.mxu0 %v379_v11  ;;  %v389_v17 = vand.u32 4294901760, %v388_v16 }
  0x75   : > { %1997 = vmatpush3.bf16.msra.mxu1 %v2559_v35  ;;  %1919 = vmatprep.mubr.f32.mxu1 %v2550_v32 }
  0x76   : > { %1999 = vmatprep.subr.bf16.mxu1 %v2520_v12  ;;  %1969 = vmatpush3.bf16.msra.mxu0 %v1966_v46 }
  0x77   : > { %1971 = vmatprep.subr.bf16.mxu0 %v2559_v35  ;;  %1850 = vmatmul.mubr.f32.gmra.mrb[2].mxu0 %v389_v17 }
  0x78   : > { %1920 = vmatmul.mubr.f32.gmra.mrb[2].mxu1 %v2555_v34  ;;  %1856 = vmatprep.mubr.f32.mxu0 %v2561_v36 }
  0x79   : > { %1926 = vmatprep.mubr.f32.mxu1 %v2542_v29 }
  0x7b   : > { %1857 = vmatmul.mubr.f32.vlgmr.msra.gmra.mrb[0].mxu0 %v2587_v55 }
  0x7c   : > { %1927 = vmatmul.mubr.f32.vlgmr.msra.gmra.mrb[0].mxu1 %v2553_v33  ;;  %1859 = vmatprep.mubr.f32.mxu0 %v2596_v60 }
  0x7d   : > { %2001 = vmatpush3.bf16.msra.mxu1 %v2520_v12  ;;  %1929 = vmatprep.mubr.f32.mxu1 %v2565_v40 }
  0x7e   : > { %2003 = vmatprep.subr.bf16.mxu1 %v1978_v18  ;;  %1973 = vmatpush3.bf16.msra.mxu0 %v2559_v35 }
  0x7f   : > { %1860 = vmatmul.mubr.f32.gmra.mrb[2].mxu0 %v2602_v6  ;;  %1975 = vmatprep.subr.bf16.mxu0 %v2520_v12 }
  0x80   : > { %1930 = vmatmul.mubr.f32.gmra.mrb[2].mxu1 %v2569_v42  ;;  %1866 = vmatprep.mubr.f32.mxu0 %v2572_v43 }
  0x81   : > { %1936 = vmatprep.mubr.f32.mxu1 %v957_v37 }
  0x83   : > { %1867 = vmatmul.mubr.f32.vlgmr.msra.gmra.mrb[0].mxu0 %v366_v62 }
  0x84   : > { %1937 = vmatmul.mubr.f32.vlgmr.msra.gmra.mrb[0].mxu1 %v967_v41  ;;  %1869 = vmatprep.mubr.f32.mxu0 %v376_v2 }
  0x85   : > { %2005 = vmatpush3.bf16.msra.mxu1 %v1978_v18  ;;  %1939 = vmatprep.mubr.f32.mxu1 %v977_v47 }
  0x86   : > { %2007 = vmatprep.subr.bf16.mxu1 %v2520_v12  ;;  %1977 = vmatpush3.bf16.msra.mxu0 %v2520_v12 }
  0x87   : > { %1870 = vmatmul.mubr.f32.gmra.mrb[2].mxu0 %v386_v9  ;;  %1979 = vmatprep.subr.bf16.mxu0 %v1978_v18 }
  0x88   : > { %1940 = vmatmul.mubr.f32.gmra.mrb[2].mxu1 %v987_v50  ;;  %1876 = vmatprep.mubr.f32.mxu0 %v357_v51 }
  0x89   : > { %1946 = vmatprep.mubr.f32.mxu1 %v2529_v22 }
  0x8b   : > { %1877 = vmatmul.mubr.f32.vlgmr.msra.gmra.mrb[0].mxu0 %v367_v3 }
  0x8c   : > { %1947 = vmatmul.mubr.f32.vlgmr.msra.gmra.mrb[0].mxu1 %v2536_v26  ;;  %1879 = vmatprep.mubr.f32.mxu0 %v377_v5 }
  0x8d   : > { %2009 = vmatpush3.bf16.msra.mxu1 %v2520_v12  ;;  %1949 = vmatprep.mubr.f32.mxu1 %v2550_v32 }
  0x8e   : > { %1981 = vmatpush3.bf16.msra.mxu0 %v1978_v18 }
  0x8f   : > { %1983 = vmatprep.subr.bf16.mxu0 %v2520_v12  ;;  %1880 = vmatmul.mubr.f32.gmra.mrb[2].mxu0 %v387_v15 }
  0x90   : > { %1950 = vmatmul.mubr.f32.gmra.mrb[2].mxu1 %v2555_v34  ;;  %1886 = vmatprep.mubr.f32.mxu0 %v2561_v36 }
  0x91   : > { %1956 = vmatprep.mubr.f32.mxu1 %v2529_v22 }
  0x93   : > { %1887 = vmatmul.mubr.f32.vlgmr.msra.gmra.mrb[0].mxu0 %v2587_v55 }
  0x94   : > { %1957 = vmatmul.mubr.f32.vlgmr.msra.gmra.mrb[0].mxu1 %v2536_v26  ;;  %1889 = vmatprep.mubr.f32.mxu0 %v2596_v60 }
  0x95   : > { %1959 = vmatprep.mubr.f32.mxu1 %v2550_v32  ;;  %1985 = vmatpush3.bf16.msra.mxu0 %v2520_v12 }
  0x97   : > { %1890 = vmatmul.mubr.f32.gmra.mrb[2].mxu0 %v2602_v6 }
  0x98   : > { %1960 = vmatmul.mubr.f32.gmra.mrb[2].mxu1 %v2555_v34  ;;  %1896 = vmatprep.mubr.f32.mxu0 %v2561_v36 }
  0x9b   : > { %1897 = vmatmul.mubr.f32.vlgmr.msra.gmra.mrb[0].mxu0 %v2587_v55 }
  0x9c   : > { %1899 = vmatprep.mubr.f32.mxu0 %v2596_v60 }
  0x9f   : > { %1900 = vmatmul.mubr.f32.gmra.mrb[2].mxu0 %v2602_v6 }
 0x167   : > { %v1958_v13 = vpop.f32.mrb[0].mxu1 }
 0x168   : > { %v1454_v14 = vpop.f32.mrb[1].mxu1 }
 0x169   : > { %1480 = vrot.lane.b32.xlu0 %v1454_v14, %s2325_s20 }
 0x16b   : > { %v1961_v12 = vpop.f32.mrb[2].mxu1 }
 0x16c   : > { %v1466_v19 = vpop.f32.mrb[3].mxu1 }
 0x16d   : > { %1482 = vrot.lane.b32.xlu0 %v1958_v13, %s2325_s20  ;;  %1484 = vrot.lane.b32.xlu1 %v1466_v19, %s2325_s20 }
 0x16e   : > { %v2663_v20 = vpop.f32.mrb[0].mxu0 }
 0x16f   : > { %1561 = vst.msk [vmem:[%s2667_s24 + $0x8] sm:$0xff] %vm1555_vm1, %v2663_v20  ;;  %v2672_v21 = vpop.f32.mrb[1].mxu0 }
 0x170   : > { %1560 = vst.msk [vmem:[%s2667_s24] sm:$0xff] %vm1555_vm1, %v2672_v21 }
 0x171   : > { %1486 = vrot.lane.b32.xlu1 %v1961_v12, %s2325_s20 }
 0x172   : > { %v2678_v22 = vpop.f32.mrb[2].mxu0 }
 0x173   : > { %1563 = vst.msk [vmem:[%s2667_s24 + $0x18] sm:$0xff] %vm1555_vm1, %v2678_v22  ;;  %v2683_v23 = vpop.f32.mrb[3].mxu0 }
 0x174   : > { %1562 = vst.msk [vmem:[%s2667_s24 + $0x10] sm:$0xff] %vm1555_vm1, %v2683_v23 }
 0x1db   : > { %v1481_v24 = vpop.permute.xlu0 %1480 }
 0x1dc   : > { %v1492_v25 = vadd.f32 %v1481_v24, %v2672_v21 }
 0x1de   : > { %v1497_v29 = vsel %vm1496_vm2, %v1492_v25, -inf }
 0x1df   : > { %v1483_v26 = vpop.permute.xlu0 %1482  ;;  %v1485_v27 = vpop.permute.xlu1 %1484 }
 0x1e0   : > { %v1493_v28 = vadd.f32 %v2663_v20, %v1483_v26  ;;  %v1494_v31 = vadd.f32 %v1485_v27, %v2683_v23 }
 0x1e2   : > { %v1498_v30 = vsel %vm1496_vm2, %v1493_v28, -inf  ;;  %v1499_v35 = vsel %vm1496_vm2, %v1494_v31, -inf }
 0x1e3   : > { %v1501_v32 = vmax.f32 %v1497_v29, %v1498_v30  ;;  %v1487_v33 = vpop.permute.xlu1 %1486 }
 0x1e4   : > { %v1495_v34 = vadd.f32 %v2678_v22, %v1487_v33 }
 0x1e6   : > { %v1500_v36 = vsel %vm1496_vm2, %v1495_v34, -inf }
 0x1e7   : > { %v1502_v37 = vmax.f32 %v1499_v35, %v1500_v36 }
 0x1e9   : > { %v1503_v38 = vmax.f32 %v1501_v32, %v1502_v37 }
 0x1eb   : > { %v1504_v39 = vsub.f32 %v1492_v25, %v1503_v38  ;;  %v1505_v40 = vsub.f32 %v1493_v28, %v1503_v38  ;;  %v1506_v41 = vsub.f32 %v1494_v31, %v1503_v38  ;;  %v1507_v42 = vsub.f32 %v1495_v34, %v1503_v38 }
 0x1ed   : > { %v1508_v43 = vmul.f32 1.442695, %v1504_v39  ;;  %v1510_v44 = vmul.f32 1.442695, %v1505_v40  ;;  %v1512_v45 = vmul.f32 1.442695, %v1506_v41 }
 0x1ee   : > { %v1514_v46 = vmul.f32 1.442695, %v1507_v42 }
 0x1ef   : > { %2133 = vpow2.f32 %v1508_v43 }
 0x1f0   : > { %2135 = vpow2.f32 %v1510_v44 }
 0x1f1   : > { %2137 = vpow2.f32 %v1512_v45 }
 0x1f2   : > { %2139 = vpow2.f32 %v1514_v46 }
 0x1f9   : > { %v2134_v47 = vpop.eup %2133 }
 0x1fa   : > { %v2136_v48 = vpop.eup %2135  ;;  %v1516_v49 = vsel %vm1496_vm2, %v2134_v47, 0.0 }
 0x1fb   : > { %v2138_v50 = vpop.eup %2137  ;;  %v1517_v51 = vsel %vm1496_vm2, %v2136_v48, 0.0 }
 0x1fc   : > { %v2140_v52 = vpop.eup %2139  ;;  %v1518_v53 = vadd.f32 %v1517_v51, %v1516_v49  ;;  %v1519_v54 = vsel %vm1496_vm2, %v2138_v50, 0.0 }
 0x1fd   : > { %v1521_v56 = vsel %vm1496_vm2, %v2140_v52, 0.0 }
 0x1fe   : > { %v1520_v55 = vadd.f32 %v1519_v54, %v1518_v53 }
 0x200   : > { %v1522_v57 = vadd.f32 %v1521_v56, %v1520_v55 }
 0x202   : > { %2141 = vrcp.f32 %v1522_v57 }
 0x20c   : > { %v2142_v58 = vpop.eup %2141 }
 0x20d   : > { %v1524_v59 = vmul.f32 %v2142_v58, %v1522_v57 }
 0x20f   : > { %v1525_v60 = vsub.f32 2.0, %v1524_v59 }
 0x211   : > { %v1526_v61 = vmul.f32 %v2142_v58, %v1525_v60 }
 0x213   : > { %v1528_v62 = vmul.f32 %v2136_v48, %v1526_v61  ;;  %v1527_v63 = vmul.f32 %v2134_v47, %v1526_v61  ;;  %v1530_v0 = vmul.f32 %v2140_v52, %v1526_v61  ;;  %v1529_v1 = vmul.f32 %v2138_v50, %v1526_v61 }
 0x214   : > { %2214 = shalt.err (!%p2211_p5)
}
 0x215   : > { %s2215_s29 = scalar_lea.hbm %s2709_s19, 512  ;;  %s2219_s24 = scalar_lea.hbm %s2810_s3, 1024 }
 0x216   : > { %p2216_p9 = scmp.ne.s32.totalorder %s2709_s19, %s2215_s29  ;;  %p2220_p3 = scmp.lt.u32.totalorder %s2709_s19, %s2810_s3 }
 0x217   : > { %p2221_p7 = scmp.lt.u32.totalorder %s2219_s24, %s2215_s29  ;;  %p2223_p13 = scmp.lt.u32.totalorder %s2215_s29, %s2709_s19 }
 0x218   : > { %p2217_p1 = pnand %p2216_p9, %p2449_p10 }
 0x219   : > { %p2222_p4 = por %p2221_p7, %p2220_p3 }
 0x21a   : > { %p2218_p2 = pneg %p2217_p1 }
 0x21b   : > { %p2224_p6 = por %p2223_p13, %p2222_p4 }
 0x21d   : > { %p2225_p8 = pnand %p2224_p6, %p2218_p2 }
 0x21f   : > { %2228 = shalt.err (!%p2225_p8)
}
 0x220   : > { %s2327_s26 = smov 128   ;;  %v1532_v2 = vadd.f32 1.0, %v1528_v62  ;;  %v1531_v3 = vadd.f32 1.0, %v1527_v63  ;;  %s2328_s21 = smov 120   ;;  %v1534_v4 = vadd.f32 1.0, %v1530_v0  ;;  %v1533_v5 = vadd.f32 1.0, %v1529_v1 }
 0x221   : > { %2057 = dma.vmem_to_hbm [thread:$0]  (%p2449_p10), %s2701_s10, 512, %s2709_s19, %s1570_s25, %s2327_s26, %s2327_s26, %s2325_s20  }
 0x222   : > { %1541 = vrot.lane.b32.xlu1 %v1532_v2, %s2328_s21  ;;  %1539 = vrot.lane.b32.xlu0 %v1531_v3, %s2328_s21  ;;  %s241_s4 = scalar_lea.vmem [#allocation7], %s1750_s22  ;;  %s2753_s19 = scalar_lea.hbm %s2809_s2, %s1768_s11 }
 0x223   : > { %s1585_s6 = sshll.u32 %s241_s4, 4  ;;  %s1565_s25 = scalar_lea.sflag [#allocation4], %s2508_s30  ;;  %s2744_s6 = int_to_ptr.vmem [resolvable:$true] %s1585_s6 }
 0x224   : > { %s2229_s29 = scalar_lea.vmem %s2744_s6, 512  ;;  %s2329_s7 = smov [#allocation7]  }
 0x225   : > { %p2230_p12 = scmp.ne.s32.totalorder %s2744_s6, %s2229_s29  ;;  %s2233_s8 = sshll.u32 %s2329_s7, 4  ;;  %s2234_s8 = int_to_ptr.vmem [resolvable:$false] %s2233_s8 }
 0x226   : > { %1545 = vrot.lane.b32.xlu1 %v1534_v4, %s2328_s21  ;;  %1543 = vrot.lane.b32.xlu0 %v1533_v5, %s2328_s21  ;;  %s2235_s24 = scalar_lea.vmem %s2234_s8, 1024  ;;  %p2236_p5 = scmp.lt.s32.totalorder %s2744_s6, %s2234_s8 }
 0x227   : > { %p2231_p11 = pnand %p2230_p12, %p2449_p10  ;;  %p2237_p9 = scmp.lt.s32.totalorder %s2235_s24, %s2229_s29 }
 0x229   : > { %p2232_p0 = pneg %p2231_p11  ;;  %p2238_p1 = por %p2237_p9, %p2236_p5 }
 0x22b   : > { %p2239_p2 = pnand %p2238_p1, %p2232_p0 }
 0x294   : > { %v1542_v6 = vpop.permute.xlu1 %1541  ;;  %v1540_v7 = vpop.permute.xlu0 %1539 }
 0x295   : > { %v1552_v8 = vmul.f32 %v2663_v20, %v1542_v6  ;;  %v1551_v9 = vmul.f32 %v1540_v7, %v2672_v21 }
 0x297   : > { %1557 = vst.msk [vmem:[%s241_s4 + $0x8] sm:$0xff] %vm1555_vm1, %v1552_v8  ;;  %1556 = vst.msk [vmem:[%s241_s4] sm:$0xff] %vm1555_vm1, %v1551_v9 }
 0x298   : > { %v1546_v10 = vpop.permute.xlu1 %1545  ;;  %v1544_v11 = vpop.permute.xlu0 %1543 }
 0x299   : > { %v1554_v15 = vmul.f32 %v2678_v22, %v1546_v10  ;;  %v1553_v16 = vmul.f32 %v1544_v11, %v2683_v23 }
 0x29b   : > { %1559 = vst.msk [vmem:[%s241_s4 + $0x18] sm:$0xff] %vm1555_vm1, %v1554_v15  ;;  %1558 = vst.msk [vmem:[%s241_s4 + $0x10] sm:$0xff] %vm1555_vm1, %v1553_v16 }
 0x29c   : > { %2242 = shalt.err (!%p2239_p2)
}
 0x29d   : > { %s2243_s15 = scalar_lea.hbm %s2753_s19, 512  ;;  %s2247_s18 = scalar_lea.hbm %s2809_s2, 1024 }
 0x29e   : > { %p2244_p3 = scmp.ne.s32.totalorder %s2753_s19, %s2243_s15  ;;  %p2248_p13 = scmp.lt.u32.totalorder %s2753_s19, %s2809_s2 }
 0x29f   : > { %p2249_p6 = scmp.lt.u32.totalorder %s2247_s18, %s2243_s15  ;;  %p2251_p12 = scmp.lt.u32.totalorder %s2243_s15, %s2753_s19 }
 0x2a0   : > { %p2245_p7 = pnand %p2244_p3, %p2449_p10 }
 0x2a1   : > { %p2250_p8 = por %p2249_p6, %p2248_p13 }
 0x2a2   : > { %p2246_p4 = pneg %p2245_p7 }
 0x2a3   : > { %p2252_p11 = por %p2251_p12, %p2250_p8 }
 0x2a5   : > { %p2253_p0 = pnand %p2252_p11, %p2246_p4 }
 0x2a7   : > { %2256 = shalt.err (!%p2253_p0)
}
 0x2a8   : > { %2056 = dma.vmem_to_hbm [thread:$0]  (%p2449_p10), %s2744_s6, 512, %s2753_s19, %s1565_s25, %s2327_s26, %s2327_s26, %s2325_s20  }
 0x2a9 PF: > { %s1618_s22 = sand.u32 1, %s2299_s12   ;;  %p2828_p5 = scmp.ne.s32.totalorder %s2818_s23, 0 }
 0x2aa   : > { %p2829_p9 = scmp.ge.s32.totalorder %s2319_s17, 2  ;;  %s1619_s10 = scalar_lea.sflag [#allocation4], %s1618_s22 }
 0x2ac   : > { %p2069_p1 = pnand %p2829_p9, %p2828_p5 }
 0x2ae   : > { %2290 = dma.done.wait (!%p2069_p1), %s1619_s10, 512  }
 0x2af   : > { %2292 = vsyncadd (!%p2069_p1), %s1619_s10, 4294966784  ;;  %s1628_s27 = scalar_lea.sflag [#allocation9], %s1618_s22 }
 0x2b0   : > { %2294 = dma.done.wait (!%p2069_p1), %s1628_s27, 512  }
 0x2b1   : > { %2296 = vsyncadd (!%p2069_p1), %s1628_s27, 4294966784  ;;  %s24_s17 = sadd.s32 1, %s2319_s17   ;;  %s2830_s12 = smov %s2303_s13 }
 0x2b2   : > { %p21_p2 = scmp.ge.s32.totalorder %s24_s17, 4   ;;  %s2831_s13 = smov %s2307_s14 }
 0x2b3   : > { %s2832_s14 = smov %s2458_s5  ;;  %s2833_s15 = smov %s2315_s16 }
 0x2b4   : > { %s2834_s16 = smov %s2836_s28  ;;  %23 = sbr.rel (!%p21_p2) target bundleno = 9 (0x9), region = 101 }
 0x2bb   :  { %1633 = vsyncpa [#allocation3], 1 }
 0x2bc   :  { %1635 = vsyncpa [#allocation3 + $0x1], 1 }
 0x2bd   :  { %1636 = vsyncpa [#allocation6], 1 }
 0x2be   :  { %1637 = vsyncpa [#allocation4], 1 }
 0x2bf   :  { %1639 = vsyncpa [#allocation4 + $0x1], 1 }
 0x2c0   :  { %1640 = vsyncpa [#allocation9], 1 }
 0x2c1   :  { %1642 = vsyncpa [#allocation9 + $0x1], 1 }

</bundles_post_ra>
